<compile_context>
chip_gen: v7x
topology: tpu7x:2x2x1
jax: 0.10.0
libtpu: 0.0.40
codegen_flags: <defaults>
</compile_context>

<pallas_src>
import functools
import math

import jax
import jax.numpy as jnp
from jax.experimental import pallas as pl
from jax.experimental.pallas import tpu as pltpu


HEAD_ORDER = ("type", "place", "place_feature", "a_progress", "b_progress")


# ----------------------------------------------------------------------------
# Kernel: one batch-tile, all 5 heads fused.
#   h = relu(x @ W1_cat + b1_cat)          (TB, 640)   bf16 x bf16 -> f32 acc
#   y = h @ W2_blockdiag + b2_cat          (TB, O_pad) bf16 x bf16 -> f32 acc
# ----------------------------------------------------------------------------
def _fused_heads_kernel(x_ref, w1_ref, b1_ref, w2_ref, b2_ref, o_ref):
    x = x_ref[...]                                                    # bf16
    h = jnp.dot(x, w1_ref[...], preferred_element_type=jnp.float32)  # f32
    h = jnp.maximum(h + b1_ref[...], 0.0)
    h = h.astype(jnp.bfloat16)
    y = jnp.dot(h, w2_ref[...], preferred_element_type=jnp.float32)
    o_ref[...] = (y + b2_ref[...]).astype(o_ref.dtype)


def _vmem_limits():
    """(tile budget bytes, vmem_limit_bytes) derived from the local TPU generation."""
    try:
        cap = pltpu.get_tpu_info().vmem_capacity_bytes
    except Exception:
        cap = 64 << 20  # conservative default (v7x-sized physical VMEM per TC)
    budget = min(cap // 2, 64 << 20)           # what the tiles may use
    limit = min((cap * 3) // 4, 96 << 20)      # scoped VMEM limit we request
    return budget, limit


def _pick_batch_tile(B, D_pad, H, O_pad, budget):
    """Largest batch tile (multiple of 16) that fits VMEM and keeps the grid >= 2
    iterations when the batch allows it (v7x 2-TC sharding)."""
    def fits(tb):
        use = (tb * D_pad * 2 * 2      # x tile   (bf16, double-buffered)
               + tb * O_pad * 4 * 2    # out tile (f32,  double-buffered)
               + D_pad * H * 2         # W1       (bf16, single-buffered)
               + H * O_pad * 2         # W2       (bf16, single-buffered)
               + (H + O_pad) * 4)      # biases   (f32)
        return use <= budget

    if B < 64:
        return B  # tiny batch: one grid step; dispatch-bound regardless of tiling
    max_tb = max(16, (B // 2) // 16 * 16)
    for tb in (2048, 1024, 512, 256, 128, 64, 32, 16):
        if tb <= max_tb and fits(tb):
            return tb
    return 16


def fused_metadata_heads(x_bf16, w1_cat, b1_cat, w2_bd, b2_cat):
    """One pallas_call computing all heads; returns packed (B, O_pad) f32 logits."""
    B, D_pad = x_bf16.shape
    H = w1_cat.shape[1]
    O_pad = w2_bd.shape[1]

    budget, vmem_limit = _vmem_limits()
    TB = _pick_batch_tile(B, D_pad, H, O_pad, budget)
    grid = (pl.cdiv(B, TB),)

    flops = 2 * B * (D_pad * H + H * O_pad)
    bytes_accessed = (2 * (B * D_pad + D_pad * H + H * O_pad)   # bf16 x + weights
                      + 4 * (H + O_pad + B * O_pad))            # f32 biases + out

    weight_specs = [
        pl.BlockSpec((D_pad, H), lambda i: (0, 0), pipeline_mode=pl.Buffered(1)),
        pl.BlockSpec((1, H), lambda i: (0, 0), pipeline_mode=pl.Buffered(1)),
        pl.BlockSpec((H, O_pad), lambda i: (0, 0), pipeline_mode=pl.Buffered(1)),
        pl.BlockSpec((1, O_pad), lambda i: (0, 0), pipeline_mode=pl.Buffered(1)),
    ]

    return pl.pallas_call(
        _fused_heads_kernel,
        out_shape=jax.ShapeDtypeStruct((B, O_pad), jnp.float32),
        grid=grid,
        in_specs=[pl.BlockSpec((TB, D_pad), lambda i: (i, 0))] + weight_specs,
        out_specs=pl.BlockSpec((TB, O_pad), lambda i: (i, 0)),
        compiler_params=pltpu.CompilerParams(
            dimension_semantics=("parallel",),
            vmem_limit_bytes=int(vmem_limit)),
        cost_estimate=pl.CostEstimate(
            flops=flops, transcendentals=0, bytes_accessed=bytes_accessed),
    )(x_bf16, w1_cat, b1_cat, w2_bd, b2_cat)


# ----------------------------------------------------------------------------
# Parameter init (PyTorch nn.Linear default init) and one-time packing.
# ----------------------------------------------------------------------------
def _init_linear(key, fan_in, fan_out, dtype=jnp.float32):
    """PyTorch nn.Linear default init: U(-1/sqrt(fan_in), 1/sqrt(fan_in))."""
    kw, kb = jax.random.split(key)
    bound = 1.0 / math.sqrt(fan_in)
    w = jax.random.uniform(kw, (fan_in, fan_out), dtype, -bound, bound)
    b = jax.random.uniform(kb, (1, fan_out), dtype, -bound, bound)
    return w, b


def init_metadata_predictor_params(key, num_accident_types, num_accident_places,
                                   num_accident_place_features,
                                   num_vehicle_a_progress_info,
                                   num_vehicle_b_progress_info, dim):
    head_cfg = [
        ("type", 256, num_accident_types),
        ("place", 64, num_accident_places),
        ("place_feature", 64, num_accident_place_features),
        ("a_progress", 128, num_vehicle_a_progress_info),
        ("b_progress", 128, num_vehicle_b_progress_info),
    ]
    params = {}
    keys = jax.random.split(key, len(head_cfg) * 2)
    for i, (name, hidden, out) in enumerate(head_cfg):
        w1, b1 = _init_linear(keys[2 * i], dim, hidden)
        w2, b2 = _init_linear(keys[2 * i + 1], hidden, out)
        params[name] = (w1, b1, w2, b2)
    return params


def pack_metadata_params(params):
    """Pack per-head params into fused tensors (done once, outside the hot path).

    Returns ((W1_cat[bf16, D_pad x 640], b1_cat[f32], W2_bd[bf16, 640 x O_pad],
    b2_cat[f32]), dim, out_sizes) where out_sizes is the static tuple of
    per-head logit widths used for slicing and dim is the unpadded feature dim.
    """
    dim = params[HEAD_ORDER[0]][0].shape[0]
    d_pad = max(128, ((dim + 127) // 128) * 128)

    hidden_sizes = tuple(params[k][0].shape[1] for k in HEAD_ORDER)
    out_sizes = tuple(params[k][2].shape[1] for k in HEAD_ORDER)
    h_total = sum(hidden_sizes)
    o_total = sum(out_sizes)
    o_pad = max(128, ((o_total + 127) // 128) * 128)  # lane-dense packed output

    # Layer 1: concatenate along the hidden axis, zero-pad the feature rows.
    w1_cat = jnp.concatenate([params[k][0] for k in HEAD_ORDER], axis=1)
    w1_cat = jnp.pad(w1_cat, ((0, d_pad - dim), (0, 0))).astype(jnp.bfloat16)
    b1_cat = jnp.concatenate([params[k][1] for k in HEAD_ORDER], axis=1)  # f32

    # Layer 2: block-diagonal packing, zero-padded to a lane-dense output width.
    w2_bd = jnp.zeros((h_total, o_pad), jnp.float32)
    b2_cat = jnp.zeros((1, o_pad), jnp.float32)
    h_off = 0
    o_off = 0
    for k, hk, ok in zip(HEAD_ORDER, hidden_sizes, out_sizes):
        w2, b2 = params[k][2], params[k][3]
        w2_bd = w2_bd.at[h_off:h_off + hk, o_off:o_off + ok].set(w2)
        b2_cat = b2_cat.at[:, o_off:o_off + ok].set(b2)
        h_off += hk
        o_off += ok
    w2_bd = w2_bd.astype(jnp.bfloat16)

    return (w1_cat, b1_cat, w2_bd, b2_cat), dim, out_sizes


# ----------------------------------------------------------------------------
# Forward: matches MetadataPredictor.forward (5-tuple of head logits).
# ----------------------------------------------------------------------------
@functools.partial(jax.jit, static_argnames=("dim", "out_sizes"))
def metadata_predictor_forward(video_features, packed, dim, out_sizes):
    B, d = video_features.shape
    d_pad = packed[0].shape[0]
    x = video_features
    if d_pad != d:
        x = jnp.pad(x, ((0, 0), (0, d_pad - d)))
    x = x.astype(jnp.bfloat16)

    y = fused_metadata_heads(x, *packed)

    # The module API requires a 5-tuple; if a downstream consumer can take the
    # packed (B, O_pad) tensor directly, return `y` instead and skip the slices.
    outs = []
    off = 0
    for o in out_sizes:
        outs.append(y[:, off:off + o])
        off += o
    return tuple(outs)


# ----------------------------------------------------------------------------
# Pure-JAX references.
# ----------------------------------------------------------------------------
def _ref_forward_f32(video_features, params):
    def head(x, w1, b1, w2, b2):
        return jnp.maximum(x @ w1 + b1, 0.0) @ w2 + b2
    return tuple(head(video_features, *params[k]) for k in HEAD_ORDER)


def _ref_forward_bf16(video_features, params):
    xb = video_features.astype(jnp.bfloat16)
    def head(w1, b1, w2, b2):
        h = jnp.dot(xb, w1.astype(jnp.bfloat16),
                    preferred_element_type=jnp.float32) + b1
        h = jnp.maximum(h, 0.0).astype(jnp.bfloat16)
        return jnp.dot(h, w2.astype(jnp.bfloat16),
                       preferred_element_type=jnp.float32) + b2
    return tuple(head(*params[k]) for k in HEAD_ORDER)


if __name__ == "__main__":
    # Small shapes consistent with the module's forward.
    batch = 8
    dim = 32
    num_accident_types = 16
    num_accident_places = 8
    num_accident_place_features = 8
    num_vehicle_a_progress_info = 12
    num_vehicle_b_progress_info = 12

    key = jax.random.PRNGKey(0)
    k_params, k_x = jax.random.split(key)
    params = init_metadata_predictor_params(
        k_params, num_accident_types, num_accident_places,
        num_accident_place_features, num_vehicle_a_progress_info,
        num_vehicle_b_progress_info, dim)
    packed, d_unpadded, out_sizes = pack_metadata_params(params)
    video_features = jax.random.normal(k_x, (batch, dim), jnp.float32)

    outs = metadata_predictor_forward(video_features, packed, d_unpadded, out_sizes)
    outs = jax.block_until_ready(outs)

    # Correctness: tight check against a dtype-mirroring bf16 reference, loose
    # semantic check against the pure-f32 reference (bf16 weights => ~1e-2 tol).
    refs_bf16 = _ref_forward_bf16(video_features, params)
    refs_f32 = _ref_forward_f32(video_features, params)
    for o, rb, rf in zip(outs, refs_bf16, refs_f32):
        assert o.shape == rf.shape, (o.shape, rf.shape)
        assert jnp.allclose(o, rb, atol=1e-3, rtol=1e-3), float(jnp.max(jnp.abs(o - rb)))
        assert jnp.allclose(o, rf, atol=5e-2, rtol=5e-2), float(jnp.max(jnp.abs(o - rf)))

    print("KERNEL_OK")
</pallas_src>

<mosaic_0001>
module attributes {stable_mosaic.version = 11 : i64} {
  func.func @_fused_heads_kernel(%arg0: i32, %arg1: memref<8x128xbf16, #tpu.memory_space<vmem>>, %arg2: memref<128x640xbf16, #tpu.memory_space<vmem>>, %arg3: memref<1x640xf32, #tpu.memory_space<vmem>>, %arg4: memref<640x128xbf16, #tpu.memory_space<vmem>>, %arg5: memref<1x128xf32, #tpu.memory_space<vmem>>, %arg6: memref<8x128xf32, #tpu.memory_space<vmem>>) attributes {dimension_semantics = [#tpu.dimension_semantics<parallel>], iteration_bounds = array<i64: 1>, scalar_prefetch = 0 : i64, scratch_operands = 0 : i64, tpu.core_type = #tpu.core_type<tc>, window_params = [{transform_indices = @transform_0, window_bounds = array<i64: 8, 128>}, {pipeline_mode = #tpu.pipeline_mode<synchronous>, transform_indices = @transform_1, window_bounds = array<i64: 128, 640>}, {pipeline_mode = #tpu.pipeline_mode<synchronous>, transform_indices = @transform_2, window_bounds = array<i64: 1, 640>}, {pipeline_mode = #tpu.pipeline_mode<synchronous>, transform_indices = @transform_3, window_bounds = array<i64: 640, 128>}, {pipeline_mode = #tpu.pipeline_mode<synchronous>, transform_indices = @transform_4, window_bounds = array<i64: 1, 128>}, {transform_indices = @transform_5, window_bounds = array<i64: 8, 128>}]} {
    %c0 = arith.constant 0 : index
    %c0_0 = arith.constant 0 : index
    %0 = vector.load %arg1[%c0, %c0_0] : memref<8x128xbf16, #tpu.memory_space<vmem>>, vector<8x128xbf16>
    %c0_1 = arith.constant 0 : index
    %c0_2 = arith.constant 0 : index
    %1 = vector.load %arg2[%c0_1, %c0_2] : memref<128x640xbf16, #tpu.memory_space<vmem>>, vector<128x640xbf16>
    %cst = arith.constant dense<0.000000e+00> : vector<8x640xf32>
    %2 = tpu.matmul %0, %1, %cst {dimension_numbers = #tpu.dot_dimension_numbers<[1], [0], [0], [1], [0, 0, 1, 1], [], []>} : vector<8x128xbf16>, vector<128x640xbf16>, vector<8x640xf32> -> vector<8x640xf32>
    %c0_3 = arith.constant 0 : index
    %c0_4 = arith.constant 0 : index
    %3 = vector.load %arg3[%c0_3, %c0_4] : memref<1x640xf32, #tpu.memory_space<vmem>>, vector<1x640xf32>
    %4 = vector.broadcast %3 : vector<1x640xf32> to vector<8x640xf32>
    %5 = arith.addf %2, %4 : vector<8x640xf32>
    %cst_5 = arith.constant 0.000000e+00 : f32
    %6 = vector.broadcast %cst_5 : f32 to vector<8x640xf32>
    %7 = arith.maximumf %5, %6 : vector<8x640xf32>
    %8 = arith.truncf %7 : vector<8x640xf32> to vector<8x640xbf16>
    %c0_6 = arith.constant 0 : index
    %c0_7 = arith.constant 0 : index
    %9 = vector.load %arg4[%c0_6, %c0_7] : memref<640x128xbf16, #tpu.memory_space<vmem>>, vector<640x128xbf16>
    %cst_8 = arith.constant dense<0.000000e+00> : vector<8x128xf32>
    %10 = tpu.matmul %8, %9, %cst_8 {dimension_numbers = #tpu.dot_dimension_numbers<[1], [0], [0], [1], [0, 0, 1, 1], [], []>} : vector<8x640xbf16>, vector<640x128xbf16>, vector<8x128xf32> -> vector<8x128xf32>
    %c0_9 = arith.constant 0 : index
    %c0_10 = arith.constant 0 : index
    %11 = vector.load %arg5[%c0_9, %c0_10] : memref<1x128xf32, #tpu.memory_space<vmem>>, vector<1x128xf32>
    %12 = vector.broadcast %11 : vector<1x128xf32> to vector<8x128xf32>
    %13 = arith.addf %10, %12 : vector<8x128xf32>
    %c0_11 = arith.constant 0 : index
    %c0_12 = arith.constant 0 : index
    %14 = vector.load %arg6[%c0_11, %c0_12] : memref<8x128xf32, #tpu.memory_space<vmem>>, vector<8x128xf32>
    tpu.vector_store %arg6[%c0_11, %c0_12], %13 {strides = array<i32>} : memref<8x128xf32, #tpu.memory_space<vmem>>, vector<8x128xf32>,
    return
  }
  func.func @transform_0(%arg0: i32) -> (i32, i32) {
    %c0_i32 = arith.constant 0 : i32
    %c0_i32_0 = arith.constant 0 : i32
    return %arg0, %c0_i32 : i32, i32
  }
  func.func @transform_1(%arg0: i32) -> (i32, i32) {
    %c0_i32 = arith.constant 0 : i32
    %c0_i32_0 = arith.constant 0 : i32
    %c0_i32_1 = arith.constant 0 : i32
    return %c0_i32, %c0_i32_0 : i32, i32
  }
  func.func @transform_2(%arg0: i32) -> (i32, i32) {
    %c0_i32 = arith.constant 0 : i32
    %c0_i32_0 = arith.constant 0 : i32
    %c0_i32_1 = arith.constant 0 : i32
    return %c0_i32, %c0_i32_0 : i32, i32
  }
  func.func @transform_3(%arg0: i32) -> (i32, i32) {
    %c0_i32 = arith.constant 0 : i32
    %c0_i32_0 = arith.constant 0 : i32
    %c0_i32_1 = arith.constant 0 : i32
    return %c0_i32, %c0_i32_0 : i32, i32
  }
  func.func @transform_4(%arg0: i32) -> (i32, i32) {
    %c0_i32 = arith.constant 0 : i32
    %c0_i32_0 = arith.constant 0 : i32
    %c0_i32_1 = arith.constant 0 : i32
    return %c0_i32, %c0_i32_0 : i32, i32
  }
  func.func @transform_5(%arg0: i32) -> (i32, i32) {
    %c0_i32 = arith.constant 0 : i32
    %c0_i32_0 = arith.constant 0 : i32
    return %arg0, %c0_i32 : i32, i32
  }
}

</mosaic_0001>

<bundles_post_ra>
// kernel: metadata_predictor_forward.1
= control target key start
LH: loop header
LB: loop body
LE: loop exit
PB: predicated region body
PF: predicated region fallthrough
CT: control target
= control target key end

     0   :  { %10 = vsyncpa [#allocation3], 0  ;;  %s1350_s0 = inlined_call_operand.vmem [shape: bf16[8,128], index: 0, kind: input, shape index: {}]   ;;  %s1351_s1 = inlined_call_operand.hbm [shape: bf16[128,640], index: 1, kind: input, shape index: {}]   ;;  %s1352_s2 = inlined_call_operand.vmem [shape: f32[1,640], index: 2, kind: input, shape index: {}]   ;;  %s1353_s3 = inlined_call_operand.hbm [shape: bf16[640,128], index: 3, kind: input, shape index: {}]   ;;  %s1354_s4 = inlined_call_operand.vmem [shape: f32[1,128], index: 4, kind: input, shape index: {}]   ;;  %s1355_s5 = inlined_call_operand.vmem [shape: f32[8,128], index: 5, kind: output, shape index: {}]  }
   0x1   :  { %11 = vsyncpa [#allocation5], 0  ;;  %s1255_s18 = smov [#allocation2]   ;;  %s1207_s22 = scalar_lea.hbm %s1351_s1, 5120 }
   0x2   :  { %s19_s19 = sshll.u32 %s1255_s18, 4  ;;  %p1208_p0 = scmp.ne.s32.totalorder %s1351_s1, %s1207_s22  ;;  %s20_s19 = int_to_ptr.vmem [resolvable:$true] %s19_s19 }
   0x3   :  { %p1211_p1 = scmp.lt.u32.totalorder %s1207_s22, %s1351_s1 }
   0x5   :  { %p1213_p2 = pnand %p1211_p1, %p1208_p0 }
   0x7   :  { %1216 = shalt.err (!%p1213_p2)
}
   0x8   :  { %s1217_s27 = scalar_lea.vmem %s20_s19, 5120  ;;  %p1222_p4 = scmp.lt.s32.totalorder %s20_s19, %s20_s19 }
   0x9   :  { %p1218_p3 = scmp.ne.s32.totalorder %s20_s19, %s1217_s27  ;;  %p1223_p5 = scmp.lt.s32.totalorder %s1217_s27, %s1217_s27 }
   0xb   :  { %p1224_p6 = por %p1223_p5, %p1222_p4 }
   0xd   :  { %p1225_p7 = pnand %p1224_p6, %p1218_p3 }
   0xf   :  { %1228 = shalt.err (!%p1225_p7)
}
  0x10   :  { %s1256_s28 = smov 320   ;;  %s1257_s29 = smov 20  }
  0x11   :  { %25 = dma.hbm_to_vmem [thread:$0]  %s1351_s1, 5120, %s20_s19, [#allocation3], %s1256_s28, %s1256_s28, %s1257_s29  }
  0x12   :  { %s1258_s7 = smov [#allocation4]   ;;  %s1229_s11 = scalar_lea.hbm %s1353_s3, 5120 }
  0x13   :  { %s33_s8 = sshll.u32 %s1258_s7, 4  ;;  %p1230_p8 = scmp.ne.s32.totalorder %s1353_s3, %s1229_s11  ;;  %s34_s8 = int_to_ptr.vmem [resolvable:$true] %s33_s8 }
  0x14   :  { %p1233_p9 = scmp.lt.u32.totalorder %s1229_s11, %s1353_s3 }
  0x16   :  { %p1235_p10 = pnand %p1233_p9, %p1230_p8 }
  0x18   :  { %1238 = shalt.err (!%p1235_p10)
}
  0x19   :  { %s1239_s16 = scalar_lea.vmem %s34_s8, 5120  ;;  %p1244_p12 = scmp.lt.s32.totalorder %s34_s8, %s34_s8 }
  0x1a   :  { %p1240_p11 = scmp.ne.s32.totalorder %s34_s8, %s1239_s16  ;;  %p1245_p13 = scmp.lt.s32.totalorder %s1239_s16, %s1239_s16 }
  0x1c   :  { %p1246_p0 = por %p1245_p13, %p1244_p12 }
  0x1e   :  { %p1247_p1 = pnand %p1246_p0, %p1240_p11 }
  0x20   :  { %1250 = shalt.err (!%p1247_p1)
}
  0x21   :  { %s1259_s1 = smov 64   ;;  %s1260_s17 = smov 4  }
  0x22   :  { %39 = dma.hbm_to_vmem [thread:$0]  %s1353_s3, 5120, %s34_s8, [#allocation5], %s1259_s1, %s1259_s1, %s1260_s17  }
  0x23   :  { %1251 = dma.done.wait [#allocation3], 5120  }
  0x24   :  { %1252 = vsyncadd [#allocation3], 4294962176 }
  0x25   :  { %1253 = dma.done.wait [#allocation5], 5120  }
  0x26   :  { %1254 = vsyncadd [#allocation5], 4294962176  ;;  %v1261_v0 = vmov 0   ;;  %v1111_v1 = vld [vmem:[#allocation2 + $0x4] ss:$20 sps:$4 sm:$0xff]   ;;  %v1262_v36 = vmov 0.0  }
  0x27   :  { %365 = vmatprep.mubr.bf16.mxu0 %v1261_v0  ;;  %406 = vmatprep.mubr.bf16.mxu1 %v1261_v0  ;;  %v1113_v2 = vld [vmem:[#allocation2] ss:$20 sps:$4 sm:$0xff]   ;;  %v1116_v4 = vld [vmem:[#allocation2 + $0x8] ss:$20 sps:$4 sm:$0xff]   ;;  %v1122_v8 = vld [vmem:[#allocation2 + $0x30] ss:$20 sps:$4 sm:$0xff]  }
  0x28   :  { %333 = vmatprep.subr.bf16.mxu0 %v1111_v1  ;;  %v1114_v3 = vld [vmem:[#allocation2 + $0xc] ss:$20 sps:$4 sm:$0xff]   ;;  %v1119_v6 = vld [vmem:[#allocation2 + $0x28] ss:$20 sps:$4 sm:$0xff]   ;;  %v1125_v10 = vld [vmem:[#allocation2 + $0x50] ss:$20 sps:$4 sm:$0xff]  }
  0x29   :  { %334 = vmatpush1.bf16.msra.mxu0 %v1113_v2  ;;  %v1117_v5 = vld [vmem:[#allocation2 + $0x2c] ss:$20 sps:$4 sm:$0xff]   ;;  %374 = vmatprep.subr.bf16.mxu1 %v1114_v3  ;;  %v1120_v7 = vld [vmem:[#allocation2 + $0x34] ss:$20 sps:$4 sm:$0xff]   ;;  %v1126_v11 = vld [vmem:[#allocation2 + $0x5c] ss:$20 sps:$4 sm:$0xff]  }
  0x2a   :  { %375 = vmatpush1.bf16.msra.mxu1 %v1116_v4  ;;  %335 = vmatprep.subr.bf16.mxu0 %v1117_v5  ;;  %v1123_v9 = vld [vmem:[#allocation2 + $0x54] ss:$20 sps:$4 sm:$0xff]   ;;  %v1129_v12 = vld [vmem:[#allocation2 + $0x7c] ss:$20 sps:$4 sm:$0xff]   ;;  %v1128_v13 = vld [vmem:[#allocation2 + $0x58] ss:$20 sps:$4 sm:$0xff]  }
  0x2b   :  { %376 = vmatprep.subr.bf16.mxu1 %v1120_v7  ;;  %v1132_v14 = vld [vmem:[#allocation2 + $0x84] ss:$20 sps:$4 sm:$0xff]   ;;  %v1134_v17 = vld [vmem:[#allocation2 + $0x80] ss:$20 sps:$4 sm:$0xff]   ;;  %v1140_v21 = vld [vmem:[#allocation2 + $0xa8] ss:$20 sps:$4 sm:$0xff]  }
  0x2c   :  { %v1131_v15 = vld [vmem:[#allocation2 + $0x78] ss:$20 sps:$4 sm:$0xff]   ;;  %v1137_v19 = vld [vmem:[#allocation2 + $0xa0] ss:$20 sps:$4 sm:$0xff]   ;;  %v1143_v23 = vld [vmem:[#allocation2 + $0xc8] ss:$20 sps:$4 sm:$0xff]  }
  0x2d   :  { %336 = vmatpush1.bf16.msra.mxu0 %v1119_v6  ;;  %v1135_v16 = vld [vmem:[#allocation2 + $0xa4] ss:$20 sps:$4 sm:$0xff]   ;;  %v1138_v18 = vld [vmem:[#allocation2 + $0xac] ss:$20 sps:$4 sm:$0xff]   ;;  %v1144_v22 = vld [vmem:[#allocation2 + $0xd4] ss:$20 sps:$4 sm:$0xff]  }
  0x2e   :  { %337 = vmatprep.subr.bf16.mxu0 %v1123_v9  ;;  %377 = vmatpush1.bf16.msra.mxu1 %v1122_v8  ;;  %v1141_v20 = vld [vmem:[#allocation2 + $0xcc] ss:$20 sps:$4 sm:$0xff]   ;;  %v1147_v24 = vld [vmem:[#allocation2 + $0xf4] ss:$20 sps:$4 sm:$0xff]   ;;  %v1146_v25 = vld [vmem:[#allocation2 + $0xd0] ss:$20 sps:$4 sm:$0xff]  }
  0x2f   :  { %378 = vmatprep.subr.bf16.mxu1 %v1126_v11  ;;  %v1150_v26 = vld [vmem:[#allocation2 + $0xfc] ss:$20 sps:$4 sm:$0xff]   ;;  %v1152_v29 = vld [vmem:[#allocation2 + $0xf8] ss:$20 sps:$4 sm:$0xff]   ;;  %v1158_v32 = vld [vmem:[#allocation2 + $0x120] ss:$20 sps:$4 sm:$0xff]   ;;  %v100_v11 = vlaneseq }
  0x30   :  { %v1149_v27 = vld [vmem:[#allocation2 + $0xf0] ss:$20 sps:$4 sm:$0xff]   ;;  %v1155_v31 = vld [vmem:[#allocation2 + $0x118] ss:$20 sps:$4 sm:$0xff]   ;;  %v49_v33 = vld [vmem:[%s1350_s0] sm:$0xf] }
  0x31   :  { %338 = vmatpush1.bf16.msra.mxu0 %v1125_v10  ;;  %v1153_v28 = vld [vmem:[#allocation2 + $0x11c] ss:$20 sps:$4 sm:$0xff]   ;;  %v1156_v30 = vld [vmem:[#allocation2 + $0x124] ss:$20 sps:$4 sm:$0xff]   ;;  %v1170_v38 = vld [vmem:[#allocation4 + $0x48] sm:$0xff]   ;;  %vm1263_vm0 = vmmov 0  }
  0x32   :  { %339 = vmatprep.subr.bf16.mxu0 %v1129_v12  ;;  %379 = vmatpush1.bf16.msra.mxu1 %v1128_v13  ;;  %v1167_v34 = vld [vmem:[#allocation4 + $0x40] sm:$0xff]   ;;  %v1160_v39 = vld [vmem:[#allocation2 + $0x38] ss:$20 sps:$4 sm:$0xff]   ;;  %v1174_v41 = vld [vmem:[#allocation4 + $0x50] sm:$0xff]   ;;  %v101_v12 = vshrl.u32 %v100_v11, 7 }
  0x33   :  { %380 = vmatprep.subr.bf16.mxu1 %v1132_v14  ;;  %v1159_v35 = vld [vmem:[#allocation2 + $0x10] ss:$20 sps:$4 sm:$0xff]   ;;  %v1172_v40 = vld [vmem:[#allocation4 + $0x8] sm:$0xff]   ;;  %v1161_v42 = vld [vmem:[#allocation2 + $0x60] ss:$20 sps:$4 sm:$0xff]  }
  0x34   :  { %v1168_v37 = vld [vmem:[#allocation4] sm:$0xff]   ;;  %v1176_v43 = vld [vmem:[#allocation4 + $0x10] sm:$0xff]   ;;  %v1178_v44 = vld [vmem:[#allocation4 + $0x58] sm:$0xff]   ;;  %v102_v13 = vsub.s32 0, %v101_v12 }
  0x35   :  { %340 = vmatpush1.bf16.msra.mxu0 %v1131_v15  ;;  %v1162_v45 = vld [vmem:[#allocation2 + $0x88] ss:$20 sps:$4 sm:$0xff]   ;;  %v1182_v47 = vld [vmem:[#allocation4 + $0x60] sm:$0xff]   ;;  %v1164_v51 = vld [vmem:[#allocation2 + $0xd8] ss:$20 sps:$4 sm:$0xff]   ;;  %v106_v15 = vsub.s32 1, %v101_v12 }
  0x36   :  { %341 = vmatprep.subr.bf16.mxu0 %v1135_v16  ;;  %381 = vmatpush1.bf16.msra.mxu1 %v1134_v17  ;;  %v1180_v46 = vld [vmem:[#allocation4 + $0x18] sm:$0xff]   ;;  %v1163_v48 = vld [vmem:[#allocation2 + $0xb0] ss:$20 sps:$4 sm:$0xff]   ;;  %v1186_v50 = vld [vmem:[#allocation4 + $0x68] sm:$0xff]   ;;  %v110_v16 = vsub.s32 2, %v101_v12  ;;  %v114_v17 = vsub.s32 3, %v101_v12 }
  0x37   :  { %382 = vmatprep.subr.bf16.mxu1 %v1138_v18  ;;  %v1184_v49 = vld [vmem:[#allocation4 + $0x20] sm:$0xff]   ;;  %v1188_v52 = vld [vmem:[#allocation4 + $0x28] sm:$0xff]   ;;  %v1177_v59 = vld [vmem:[#allocation4 + $0xd0] sm:$0xff]  }
  0x38   :  { %v1165_v53 = vld [vmem:[#allocation2 + $0x100] ss:$20 sps:$4 sm:$0xff]   ;;  %v1166_v54 = vld [vmem:[#allocation2 + $0x128] ss:$20 sps:$4 sm:$0xff]  }
  0x39   :  { %342 = vmatpush1.bf16.msra.mxu0 %v1137_v19  ;;  %v1169_v55 = vld [vmem:[#allocation4 + $0xc0] sm:$0xff]   ;;  %v1173_v57 = vld [vmem:[#allocation4 + $0xc8] sm:$0xff]   ;;  %v1179_v60 = vld [vmem:[#allocation4 + $0x90] sm:$0xff]  }
  0x3a   :  { %343 = vmatprep.subr.bf16.mxu0 %v1141_v20  ;;  %383 = vmatpush1.bf16.msra.mxu1 %v1140_v21  ;;  %v1171_v56 = vld [vmem:[#allocation4 + $0x80] sm:$0xff]   ;;  %v1175_v58 = vld [vmem:[#allocation4 + $0x88] sm:$0xff]   ;;  %v1181_v61 = vld [vmem:[#allocation4 + $0xd8] sm:$0xff]  }
  0x3b   :  { %384 = vmatprep.subr.bf16.mxu1 %v1144_v22  ;;  %v1183_v62 = vld [vmem:[#allocation4 + $0x98] sm:$0xff]   ;;  %v1185_v63 = vld [vmem:[#allocation4 + $0xe0] sm:$0xff]   ;;  %v1189_v1 = vld [vmem:[#allocation4 + $0xe8] sm:$0xff]  }
  0x3c   :  { %v1187_v0 = vld [vmem:[#allocation4 + $0xa0] sm:$0xff]   ;;  %v1190_v2 = vld [vmem:[#allocation4 + $0x70] sm:$0xff]   ;;  %v1191_v3 = vld [vmem:[#allocation4 + $0xa8] sm:$0xff]  }
  0x3d   :  { %344 = vmatpush1.bf16.msra.mxu0 %v1143_v23  ;;  %v1192_v4 = vld [vmem:[#allocation4 + $0x30] sm:$0xff]   ;;  %v1194_v6 = vld [vmem:[#allocation4 + $0x78] sm:$0xff]   ;;  %v98_v14 = vld [vmem:[%s1352_s2] sm:$0x1f] }
  0x3e   :  { %345 = vmatprep.subr.bf16.mxu0 %v1147_v24  ;;  %385 = vmatpush1.bf16.msra.mxu1 %v1146_v25  ;;  %v1193_v5 = vld [vmem:[#allocation4 + $0xf0] sm:$0xff]   ;;  %v1196_v8 = vld [vmem:[#allocation4 + $0x38] sm:$0xff]   ;;  %v103_v18 = vrot.slane %v98_v14, %v102_v13  ;;  %v107_v19 = vrot.slane %v98_v14, %v106_v15  ;;  %v111_v20 = vrot.slane %v98_v14, %v110_v16 }
  0x3f   :  { %386 = vmatprep.subr.bf16.mxu1 %v1150_v26  ;;  %v1195_v7 = vld [vmem:[#allocation4 + $0xb0] sm:$0xff]   ;;  %v1197_v9 = vld [vmem:[#allocation4 + $0xf8] sm:$0xff]   ;;  %v115_v22 = vrot.slane %v98_v14, %v114_v17 }
  0x40   :  { %v1198_v10 = vld [vmem:[#allocation4 + $0xb8] sm:$0xff]  }
  0x41   :  { %346 = vmatpush1.bf16.msra.mxu0 %v1149_v27 }
  0x42   :  { %347 = vmatprep.subr.bf16.mxu0 %v1153_v28  ;;  %387 = vmatpush1.bf16.msra.mxu1 %v1152_v29 }
  0x43   :  { %388 = vmatprep.subr.bf16.mxu1 %v1156_v30 }
  0x45   :  { %348 = vmatpush1.bf16.msra.mxu0 %v1155_v31 }
  0x46   :  { %1062 = vmatprep.subr.bf16.mxu0 %v1262_v36  ;;  %389 = vmatpush1.bf16.msra.mxu1 %v1158_v32 }
  0x47   :  { %1009 = vmatprep.subr.bf16.mxu1 %v1167_v34 }
  0x48   :  { %366 = vmatmul.mubr.bf16.vlgmr.msra.gmra.mrb[0].mxu0 %v49_v33 }
  0x49   :  { %1063 = vmatpush3.bf16.msra.mxu0 %v1159_v35  ;;  %1078 = vmatprep.mubr.msk.bf16.mxu0 %vm1263_vm0, %v1262_v36 }
  0x4a   :  { %407 = vmatmul.mubr.bf16.vlgmr.msra.gmra.mrb[0].mxu1 %v49_v33  ;;  %1064 = vmatprep.subr.bf16.mxu0 %v1262_v36 }
  0x4b   :  { %1010 = vmatpush3.bf16.msra.mxu1 %v1168_v37 }
  0x4c   :  { %1011 = vmatprep.subr.bf16.mxu1 %v1170_v38 }
  0x4d   :  { %1065 = vmatpush3.bf16.msra.mxu0 %v1160_v39 }
  0x4e   :  { %1066 = vmatprep.subr.bf16.mxu0 %v1262_v36 }
  0x4f   :  { %1012 = vmatpush3.bf16.msra.mxu1 %v1172_v40  ;;  %v1199_v40 = vld [vmem:[#allocation4 + $0x100] sm:$0xff]  }
  0x50   :  { %1013 = vmatprep.subr.bf16.mxu1 %v1174_v41 }
  0x51   :  { %1067 = vmatpush3.bf16.msra.mxu0 %v1161_v42 }
  0x52   :  { %1068 = vmatprep.subr.bf16.mxu0 %v1262_v36 }
  0x53   :  { %1014 = vmatpush3.bf16.msra.mxu1 %v1176_v43 }
  0x54   :  { %1015 = vmatprep.subr.bf16.mxu1 %v1178_v44  ;;  %v1200_v44 = vld [vmem:[#allocation4 + $0x108] sm:$0xff]  }
  0x55   :  { %1069 = vmatpush3.bf16.msra.mxu0 %v1162_v45  ;;  %v1201_v45 = vld [vmem:[#allocation4 + $0x110] sm:$0xff]  }
  0x56   :  { %1070 = vmatprep.subr.bf16.mxu0 %v1262_v36 }
  0x57   :  { %1016 = vmatpush3.bf16.msra.mxu1 %v1180_v46  ;;  %v1202_v46 = vld [vmem:[#allocation4 + $0x118] sm:$0xff]  }
  0x58   :  { %1017 = vmatprep.subr.bf16.mxu1 %v1182_v47  ;;  %v1203_v47 = vld [vmem:[#allocation4 + $0x120] sm:$0xff]  }
  0x59   :  { %1071 = vmatpush3.bf16.msra.mxu0 %v1163_v48  ;;  %v118_v48 = vsub.s32 4, %v101_v12 }
  0x5a   :  { %1072 = vmatprep.subr.bf16.mxu0 %v1262_v36 }
  0x5b   :  { %1018 = vmatpush3.bf16.msra.mxu1 %v1184_v49  ;;  %v1204_v49 = vld [vmem:[#allocation4 + $0x128] sm:$0xff]  }
  0x5c   :  { %1019 = vmatprep.subr.bf16.mxu1 %v1186_v50  ;;  %v119_v50 = vrot.slane %v98_v14, %v118_v48 }
  0x5d   :  { %1073 = vmatpush3.bf16.msra.mxu0 %v1164_v51  ;;  %v1205_v51 = vld [vmem:[#allocation4 + $0x130] sm:$0xff]  }
  0x5e   :  { %1074 = vmatprep.subr.bf16.mxu0 %v1262_v36 }
  0x5f   :  { %1020 = vmatpush3.bf16.msra.mxu1 %v1188_v52 }
  0x60   :  { %1021 = vmatprep.subr.bf16.mxu1 %v1190_v2 }
  0x61   :  { %1075 = vmatpush3.bf16.msra.mxu0 %v1165_v53 }
  0x62   :  { %1076 = vmatprep.subr.bf16.mxu0 %v1262_v36 }
  0x63   :  { %1022 = vmatpush3.bf16.msra.mxu1 %v1192_v4 }
  0x64   :  { %1023 = vmatprep.subr.bf16.mxu1 %v1194_v6 }
  0x65   :  { %1077 = vmatpush3.bf16.msra.mxu0 %v1166_v54 }
  0x66   :  { %1031 = vmatprep.subr.bf16.mxu0 %v1169_v55 }
  0x67   :  { %1024 = vmatpush3.bf16.msra.mxu1 %v1196_v8 }
  0x68   :  { %1079 = vmatmul.mubr.bf16.vlgmr.msra.gmra.mrb[4].mxu0 %v49_v33  ;;  %1082 = vmatprep.subr.bf16.mxu1 %v1262_v36 }
  0x69   :  { %1032 = vmatpush3.bf16.msra.mxu0 %v1171_v56  ;;  %v1206_v56 = vld [vmem:[#allocation4 + $0x138] sm:$0xff]  }
  0x6a   :  { %1033 = vmatprep.subr.bf16.mxu0 %v1173_v57 }
  0x6d   :  { %1034 = vmatpush3.bf16.msra.mxu0 %v1175_v58 }
  0x6e   :  { %1035 = vmatprep.subr.bf16.mxu0 %v1177_v59 }
  0x71   :  { %1036 = vmatpush3.bf16.msra.mxu0 %v1179_v60 }
  0x72   :  { %1037 = vmatprep.subr.bf16.mxu0 %v1181_v61  ;;  %v959_v61 = vld [vmem:[%s1354_s4] ss:$0 sm:$0xff] }
  0x75   :  { %1038 = vmatpush3.bf16.msra.mxu0 %v1183_v62 }
  0x76   :  { %1039 = vmatprep.subr.bf16.mxu0 %v1185_v63 }
  0x79   :  { %1040 = vmatpush3.bf16.msra.mxu0 %v1187_v0 }
  0x7a   :  { %1041 = vmatprep.subr.bf16.mxu0 %v1189_v1 }
  0x7d   :  { %1042 = vmatpush3.bf16.msra.mxu0 %v1191_v3 }
  0x7e   :  { %1043 = vmatprep.subr.bf16.mxu0 %v1193_v5 }
  0x81   :  { %1044 = vmatpush3.bf16.msra.mxu0 %v1195_v7 }
  0x82   :  { %1045 = vmatprep.subr.bf16.mxu0 %v1197_v9 }
  0x85   :  { %1046 = vmatpush3.bf16.msra.mxu0 %v1198_v10 }
 0x11b   :  { %v367_v21 = vpop.f32.mrb[0].mxu0 }
 0x11c   :  { %v368_v23 = vadd.f32 %v367_v21, %v103_v18  ;;  %v369_v24 = vpop.f32.mrb[1].mxu0 }
 0x11d   :  { %v370_v25 = vadd.f32 %v369_v24, %v107_v19  ;;  %v371_v26 = vpop.f32.mrb[2].mxu0  ;;  %v408_v27 = vpop.f32.mrb[0].mxu1 }
 0x11e   :  { %v455_v28 = vmax.f32 %v368_v23, 0.0  ;;  %v409_v29 = vadd.f32 %v408_v27, %v111_v20  ;;  %v372_v30 = vpop.f32.mrb[3].mxu0  ;;  %v410_v31 = vpop.f32.mrb[1].mxu1 }
 0x11f   :  { %v456_v32 = vmax.f32 %v370_v25, 0.0  ;;  %v411_v33 = vadd.f32 %v410_v31, %v115_v22  ;;  %v412_v34 = vpop.f32.mrb[2].mxu1 }
 0x120   :  { %v457_v35 = vmax.f32 %v409_v29, 0.0  ;;  %v413_v37 = vpop.f32.mrb[3].mxu1  ;;  %v460_v41 = vpack.c.bf16 %v455_v28, %v455_v28 }
 0x121   :  { %v461_v38 = vpack.c.bf16 %v456_v32, %v456_v32  ;;  %v458_v39 = vmax.f32 %v411_v33, 0.0 }
 0x122   :  { %v462_v42 = vpack.c.bf16 %v457_v35, %v457_v35 }
 0x123   :  { %v463_v43 = vpack.c.bf16 %v458_v39, %v458_v39  ;;  %824 = vmatprep.mubr.bf16.mxu1 %v461_v38 }
 0x124   :  { %825 = vmatmul.mubr.bf16.vlgmr.msra.gmra.mrb[4].mxu1 %v460_v41 }
 0x125   :  { %1083 = vmatpush3.bf16.msra.mxu1 %v1199_v40  ;;  %864 = vmatprep.mubr.bf16.mxu0 %v463_v43 }
 0x126   :  { %865 = vmatmul.mubr.bf16.vlgmr.msra.gmra.mrb[8].mxu0 %v462_v42  ;;  %1084 = vmatprep.subr.bf16.mxu1 %v1262_v36 }
 0x127   :  { %1098 = vmatprep.mubr.msk.bf16.mxu1 %vm1263_vm0, %v1262_v36 }
 0x129   :  { %1085 = vmatpush3.bf16.msra.mxu1 %v1200_v44 }
 0x12a   :  { %1086 = vmatprep.subr.bf16.mxu1 %v1262_v36 }
 0x12d   :  { %1087 = vmatpush3.bf16.msra.mxu1 %v1201_v45 }
 0x12e   :  { %1088 = vmatprep.subr.bf16.mxu1 %v1262_v36 }
 0x131   :  { %1089 = vmatpush3.bf16.msra.mxu1 %v1202_v46 }
 0x132   :  { %1090 = vmatprep.subr.bf16.mxu1 %v1262_v36 }
 0x135   :  { %1091 = vmatpush3.bf16.msra.mxu1 %v1203_v47 }
 0x136   :  { %1092 = vmatprep.subr.bf16.mxu1 %v1262_v36 }
 0x139   :  { %1093 = vmatpush3.bf16.msra.mxu1 %v1204_v49 }
 0x13a   :  { %1094 = vmatprep.subr.bf16.mxu1 %v1262_v36 }
 0x13b   :  { %v449_v52 = vpop.f32.mrb[4].mxu0 }
 0x13c   :  { %v450_v53 = vadd.f32 %v449_v52, %v119_v50  ;;  %v1080_v54 = vpop.f32.mrb[5].mxu0 }
 0x13d   :  { %1095 = vmatpush3.bf16.msra.mxu1 %v1205_v51  ;;  %v452_v55 = vpop.f32.mrb[6].mxu0 }
 0x13e   :  { %v459_v57 = vmax.f32 %v450_v53, 0.0  ;;  %v1081_v58 = vpop.f32.mrb[7].mxu0  ;;  %1096 = vmatprep.subr.bf16.mxu1 %v1262_v36 }
 0x140   :  { %v464_v59 = vpack.c.bf16 %v459_v57, %v459_v57 }
 0x141   :  { %1097 = vmatpush3.bf16.msra.mxu1 %v1206_v56 }
 0x144   :  { %1099 = vmatmul.mubr.bf16.vlgmr.msra.gmra.mrb[8].mxu1 %v464_v59 }
 0x1f7   :  { %v1025_v60 = vpop.f32.mrb[4].mxu1 }
 0x1f8   :  { %v1026_v62 = vpop.f32.mrb[5].mxu1 }
 0x1f9   :  { %v1027_v63 = vadd.f32 %v1026_v62, %v1025_v60  ;;  %v1028_v0 = vpop.f32.mrb[6].mxu1  ;;  %v1047_v1 = vpop.f32.mrb[8].mxu0 }
 0x1fa   :  { %v1029_v2 = vpop.f32.mrb[7].mxu1  ;;  %v1048_v3 = vpop.f32.mrb[9].mxu0 }
 0x1fb   :  { %v827_v4 = vadd.f32 %v1027_v63, %v959_v61  ;;  %v1049_v5 = vadd.f32 %v1048_v3, %v1047_v1  ;;  %v1050_v6 = vpop.f32.mrb[10].mxu0 }
 0x1fc   :  { %v1051_v7 = vpop.f32.mrb[11].mxu0 }
 0x1fd   :  { %v867_v8 = vadd.f32 %v1049_v5, %v827_v4 }
 0x217   :  { %v906_v36 = vpop.f32.mrb[8].mxu1 }
 0x218   :  { %v907_v9 = vadd.f32 %v906_v36, %v867_v8  ;;  %v1100_v10 = vpop.f32.mrb[9].mxu1 }
 0x219   :  { %v909_v11 = vpop.f32.mrb[10].mxu1 }
 0x21a   :  { %912 = vst [vmem:[%s1355_s5] sm:$0xff] %v907_v9  ;;  %v1101_v12 = vpop.f32.mrb[11].mxu1 }
 0x21b   :  { %917 = vsyncpa [#allocation3], 1 }
 0x21c   :  { %918 = vsyncpa [#allocation5], 1 }

</bundles_post_ra>
